<compile_context>
chip_gen: v7x
topology: tpu7x:2x2x1
jax: 0.10.0
libtpu: 0.0.40
codegen_flags: <defaults>
</compile_context>

<pallas_src>
from functools import partial

import jax
import jax.numpy as jnp
from jax.experimental import pallas as pl
from jax.experimental.pallas import tpu as pltpu


def rnn_net_kernel(ids_ref, wxh_ref, whh_ref, b_ref, wout_ref, bout_ref,
                   out_ref, hs_ref, *, B, T, V):
    """Fused embedding+input-proj matmul, tanh RNN over T steps, one output matmul.

    ids_ref : (T*B, 1) int32, t-major token ids
    wxh_ref : (V, H)   fused emb @ W_ih
    whh_ref : (H, H)
    b_ref   : (1, H)   b_ih + b_hh
    wout_ref: (H, Vp)  lane-padded Linear weight (Vp = 128)
    bout_ref: (1, Vp)  lane-padded Linear bias
    out_ref : (T*B, Vp) logits (t-major rows, lane-dense store)
    hs_ref  : (T*B, H)  VMEM scratch holding every h_t
    """
    TB, H = hs_ref.shape

    # --- one-hot for every token at once (NOT per timestep) -----------------
    # TODO(synk): like the one-hot trick, out-of-range ids silently map to a
    # zero embedding instead of raising like nn.Embedding.
    ids = ids_ref[...]                                                # (T*B, 1)
    onehot = (ids == jax.lax.broadcasted_iota(jnp.int32, (TB, V), 1)
              ).astype(jnp.float32)                                   # (T*B, V)

    # One batched matmul gives the input contribution for all timesteps.
    xw = jnp.dot(onehot, wxh_ref[...],
                 preferred_element_type=jnp.float32)                  # (T*B, H)

    whh = whh_ref[...]                                                # (H, H)
    b = b_ref[...]                                                    # (1, H)

    # --- serial recurrence: only h @ W_hh + tanh on the critical path -------
    # T is small (6) so a static unroll is fine; switch to lax.fori_loop with
    # h carried in a scratch ref if T ever grows past ~32.
    h = jnp.zeros((B, H), jnp.float32)                                # h_0 = 0
    for t in range(T):
        h = jnp.tanh(xw[t * B:(t + 1) * B, :]
                     + jnp.dot(h, whh, preferred_element_type=jnp.float32)
                     + b)                                             # (B, H)
        hs_ref[t * B:(t + 1) * B, :] = h

    # --- output projection hoisted out of the loop ---------------------------
    # One matmul, one unmasked lane-dense (width 128) store.
    out_ref[...] = (jnp.dot(hs_ref[...], wout_ref[...],
                            preferred_element_type=jnp.float32)
                    + bout_ref[...])                                  # (T*B, Vp)


def net_forward(x, params):
    """x: (B, T) int32 token ids. Returns (B*T, V) float32 logits."""
    B, T = x.shape
    V, _ = params["emb"].shape
    H = params["w_hh"].shape[0]
    Vp = ((V + 127) // 128) * 128                  # lane-pad vocab dim to 128

    # Cheap one-time parameter prep in the wrapper (plain JAX, not per-step):
    w_xh = params["emb"] @ params["w_ih"]          # (V, H) fused emb + input proj
    b = params["b_ih"] + params["b_hh"]            # (1, H)
    w_out_p = jnp.pad(params["w_out"], ((0, 0), (0, Vp - V)))   # (H, Vp)
    b_out_p = jnp.pad(params["b_out"], ((0, 0), (0, Vp - V)))   # (1, Vp)

    # Token ids in t-major order so each timestep's rows are contiguous.
    ids_tm = x.T.reshape(T * B, 1).astype(jnp.int32)

    vmem = pl.BlockSpec(memory_space=pltpu.MemorySpace.VMEM)
    kernel = partial(rnn_net_kernel, B=B, T=T, V=V)
    out_tm = pl.pallas_call(
        kernel,
        out_shape=jax.ShapeDtypeStruct((T * B, Vp), jnp.float32),
        in_specs=[vmem] * 6,
        out_specs=vmem,
        scratch_shapes=[pltpu.VMEM((T * B, H), jnp.float32)],
    )(ids_tm, w_xh, params["w_hh"], b, w_out_p, b_out_p)

    # Layout plumbing only: t-major -> b-major rows, drop lane padding.
    out = out_tm.reshape(T, B, Vp).transpose(1, 0, 2).reshape(B * T, Vp)
    return out[:, :V]


def net_forward_ref(x, params):
    """Pure-JAX reference of the PyTorch forward, for correctness checking."""
    emb = params["emb"][x]                                 # (B, T, D)
    B, T, _ = emb.shape
    H = params["w_hh"].shape[0]
    b = params["b_ih"] + params["b_hh"]

    def step(h, x_t):
        h_new = jnp.tanh(x_t @ params["w_ih"] + h @ params["w_hh"] + b)
        return h_new, h_new

    _, hs = jax.lax.scan(step, jnp.zeros((B, H), jnp.float32),
                         jnp.swapaxes(emb, 0, 1))          # (T, B, H)
    hs = jnp.swapaxes(hs, 0, 1)                            # (B, T, H)
    logits = hs @ params["w_out"] + params["b_out"]        # (B, T, V)
    return logits.reshape(-1, logits.shape[-1])


def init_params(key, vocab_size, input_size, hidden_size):
    """Deterministic PyTorch-style uniform init (synthetic, no checkpoint)."""
    ks = jax.random.split(key, 7)
    def u(k, shape, bound):
        return jax.random.uniform(k, shape, jnp.float32, -bound, bound)
    rnn_b = 1.0 / jnp.sqrt(hidden_size)
    lin_b = 1.0 / jnp.sqrt(hidden_size)
    return {
        "emb":   jax.random.normal(ks[0], (vocab_size, input_size), jnp.float32),
        "w_ih":  u(ks[1], (input_size, hidden_size), rnn_b),   # PyTorch W_ih^T
        "w_hh":  u(ks[2], (hidden_size, hidden_size), rnn_b),  # PyTorch W_hh^T
        "b_ih":  u(ks[3], (1, hidden_size), rnn_b),
        "b_hh":  u(ks[4], (1, hidden_size), rnn_b),
        "w_out": u(ks[5], (hidden_size, vocab_size), lin_b),   # Linear W^T
        "b_out": u(ks[6], (1, vocab_size), lin_b),
    }


if __name__ == "__main__":
    hidden_size = 20
    input_size = 5
    sentence = "Repeat is the best medicine for memory".split()
    vocab = list(set(sentence))
    word2index = {tkn: i for i, tkn in enumerate(vocab, 1)}
    vocab_size = len(word2index)   # 7

    key = jax.random.PRNGKey(0)
    k_param, k_x = jax.random.split(key)
    params = init_params(k_param, vocab_size, input_size, hidden_size)

    # Small batch of token-id sequences (B=2, T = len(sentence)-1 = 6).
    B, T = 2, len(sentence) - 1
    x = jax.random.randint(k_x, (B, T), 0, vocab_size, dtype=jnp.int32)

    out = net_forward(x, params)
    out = jax.block_until_ready(out)

    ref = jax.block_until_ready(net_forward_ref(x, params))
    assert out.shape == (B * T, vocab_size), out.shape
    assert jnp.allclose(out, ref, rtol=1e-4, atol=1e-4), \
        f"max abs err {jnp.max(jnp.abs(out - ref))}"

    print("KERNEL_OK")
</pallas_src>

<mosaic_0001>
module attributes {stable_mosaic.version = 11 : i64} {
  func.func @rnn_net_kernel(%arg0: memref<12x1xi32, #tpu.memory_space<vmem>>, %arg1: memref<7x20xf32, #tpu.memory_space<vmem>>, %arg2: memref<20x20xf32, #tpu.memory_space<vmem>>, %arg3: memref<1x20xf32, #tpu.memory_space<vmem>>, %arg4: memref<20x128xf32, #tpu.memory_space<vmem>>, %arg5: memref<1x128xf32, #tpu.memory_space<vmem>>, %arg6: memref<12x128xf32, #tpu.memory_space<vmem>>, %arg7: memref<12x20xf32, #tpu.memory_space<vmem>>) attributes {dimension_semantics = [], scalar_prefetch = 0 : i64, scratch_operands = 1 : i64, tpu.core_type = #tpu.core_type<tc>} {
    %c0 = arith.constant 0 : index
    %c0_0 = arith.constant 0 : index
    %0 = vector.load %arg0[%c0, %c0_0] : memref<12x1xi32, #tpu.memory_space<vmem>>, vector<12x1xi32>
    %1 = tpu.iota {dimensions = array<i32: 1>} : vector<12x7xi32>
    %2 = vector.broadcast %0 : vector<12x1xi32> to vector<12x7xi32>
    %3 = arith.cmpi eq, %2, %1 : vector<12x7xi32>
    %4 = arith.extui %3 : vector<12x7xi1> to vector<12x7xi32>
    %5 = arith.sitofp %4 : vector<12x7xi32> to vector<12x7xf32>
    %c0_1 = arith.constant 0 : index
    %c0_2 = arith.constant 0 : index
    %6 = vector.load %arg1[%c0_1, %c0_2] : memref<7x20xf32, #tpu.memory_space<vmem>>, vector<7x20xf32>
    %cst = arith.constant dense<0.000000e+00> : vector<12x20xf32>
    %7 = tpu.matmul %5, %6, %cst {dimension_numbers = #tpu.dot_dimension_numbers<[1], [0], [0], [1], [0, 0, 1, 1], [], []>} : vector<12x7xf32>, vector<7x20xf32>, vector<12x20xf32> -> vector<12x20xf32>
    %c0_3 = arith.constant 0 : index
    %c0_4 = arith.constant 0 : index
    %8 = vector.load %arg2[%c0_3, %c0_4] : memref<20x20xf32, #tpu.memory_space<vmem>>, vector<20x20xf32>
    %c0_5 = arith.constant 0 : index
    %c0_6 = arith.constant 0 : index
    %9 = vector.load %arg3[%c0_5, %c0_6] : memref<1x20xf32, #tpu.memory_space<vmem>>, vector<1x20xf32>
    %cst_7 = arith.constant 0.000000e+00 : f32
    %10 = vector.broadcast %cst_7 : f32 to vector<2x20xf32>
    %11 = vector.extract_strided_slice %7 {offsets = [0, 0], sizes = [2, 20], strides = [1, 1]} : vector<12x20xf32> to vector<2x20xf32>
    %cst_8 = arith.constant dense<0.000000e+00> : vector<2x20xf32>
    %12 = tpu.matmul %10, %8, %cst_8 {dimension_numbers = #tpu.dot_dimension_numbers<[1], [0], [0], [1], [0, 0, 1, 1], [], []>} : vector<2x20xf32>, vector<20x20xf32>, vector<2x20xf32> -> vector<2x20xf32>
    %13 = arith.addf %11, %12 : vector<2x20xf32>
    %14 = vector.broadcast %9 : vector<1x20xf32> to vector<2x20xf32>
    %15 = arith.addf %13, %14 : vector<2x20xf32>
    %16 = math.tanh %15 : vector<2x20xf32>
    %c0_9 = arith.constant 0 : index
    %c0_10 = arith.constant 0 : index
    %17 = vector.load %arg7[%c0_9, %c0_10] : memref<12x20xf32, #tpu.memory_space<vmem>>, vector<2x20xf32>
    tpu.vector_store %arg7[%c0_9, %c0_10], %16 {strides = array<i32>} : memref<12x20xf32, #tpu.memory_space<vmem>>, vector<2x20xf32>,
    %18 = vector.extract_strided_slice %7 {offsets = [2, 0], sizes = [2, 20], strides = [1, 1]} : vector<12x20xf32> to vector<2x20xf32>
    %cst_11 = arith.constant dense<0.000000e+00> : vector<2x20xf32>
    %19 = tpu.matmul %16, %8, %cst_11 {dimension_numbers = #tpu.dot_dimension_numbers<[1], [0], [0], [1], [0, 0, 1, 1], [], []>} : vector<2x20xf32>, vector<20x20xf32>, vector<2x20xf32> -> vector<2x20xf32>
    %20 = arith.addf %18, %19 : vector<2x20xf32>
    %21 = vector.broadcast %9 : vector<1x20xf32> to vector<2x20xf32>
    %22 = arith.addf %20, %21 : vector<2x20xf32>
    %23 = math.tanh %22 : vector<2x20xf32>
    %c2 = arith.constant 2 : index
    %c0_12 = arith.constant 0 : index
    %24 = vector.load %arg7[%c2, %c0_12] : memref<12x20xf32, #tpu.memory_space<vmem>>, vector<2x20xf32>
    tpu.vector_store %arg7[%c2, %c0_12], %23 {strides = array<i32>} : memref<12x20xf32, #tpu.memory_space<vmem>>, vector<2x20xf32>,
    %25 = vector.extract_strided_slice %7 {offsets = [4, 0], sizes = [2, 20], strides = [1, 1]} : vector<12x20xf32> to vector<2x20xf32>
    %cst_13 = arith.constant dense<0.000000e+00> : vector<2x20xf32>
    %26 = tpu.matmul %23, %8, %cst_13 {dimension_numbers = #tpu.dot_dimension_numbers<[1], [0], [0], [1], [0, 0, 1, 1], [], []>} : vector<2x20xf32>, vector<20x20xf32>, vector<2x20xf32> -> vector<2x20xf32>
    %27 = arith.addf %25, %26 : vector<2x20xf32>
    %28 = vector.broadcast %9 : vector<1x20xf32> to vector<2x20xf32>
    %29 = arith.addf %27, %28 : vector<2x20xf32>
    %30 = math.tanh %29 : vector<2x20xf32>
    %c4 = arith.constant 4 : index
    %c0_14 = arith.constant 0 : index
    %31 = vector.load %arg7[%c4, %c0_14] : memref<12x20xf32, #tpu.memory_space<vmem>>, vector<2x20xf32>
    tpu.vector_store %arg7[%c4, %c0_14], %30 {strides = array<i32>} : memref<12x20xf32, #tpu.memory_space<vmem>>, vector<2x20xf32>,
    %32 = vector.extract_strided_slice %7 {offsets = [6, 0], sizes = [2, 20], strides = [1, 1]} : vector<12x20xf32> to vector<2x20xf32>
    %cst_15 = arith.constant dense<0.000000e+00> : vector<2x20xf32>
    %33 = tpu.matmul %30, %8, %cst_15 {dimension_numbers = #tpu.dot_dimension_numbers<[1], [0], [0], [1], [0, 0, 1, 1], [], []>} : vector<2x20xf32>, vector<20x20xf32>, vector<2x20xf32> -> vector<2x20xf32>
    %34 = arith.addf %32, %33 : vector<2x20xf32>
    %35 = vector.broadcast %9 : vector<1x20xf32> to vector<2x20xf32>
    %36 = arith.addf %34, %35 : vector<2x20xf32>
    %37 = math.tanh %36 : vector<2x20xf32>
    %c6 = arith.constant 6 : index
    %c0_16 = arith.constant 0 : index
    %38 = vector.load %arg7[%c6, %c0_16] : memref<12x20xf32, #tpu.memory_space<vmem>>, vector<2x20xf32>
    tpu.vector_store %arg7[%c6, %c0_16], %37 {strides = array<i32>} : memref<12x20xf32, #tpu.memory_space<vmem>>, vector<2x20xf32>,
    %39 = vector.extract_strided_slice %7 {offsets = [8, 0], sizes = [2, 20], strides = [1, 1]} : vector<12x20xf32> to vector<2x20xf32>
    %cst_17 = arith.constant dense<0.000000e+00> : vector<2x20xf32>
    %40 = tpu.matmul %37, %8, %cst_17 {dimension_numbers = #tpu.dot_dimension_numbers<[1], [0], [0], [1], [0, 0, 1, 1], [], []>} : vector<2x20xf32>, vector<20x20xf32>, vector<2x20xf32> -> vector<2x20xf32>
    %41 = arith.addf %39, %40 : vector<2x20xf32>
    %42 = vector.broadcast %9 : vector<1x20xf32> to vector<2x20xf32>
    %43 = arith.addf %41, %42 : vector<2x20xf32>
    %44 = math.tanh %43 : vector<2x20xf32>
    %c8 = arith.constant 8 : index
    %c0_18 = arith.constant 0 : index
    %45 = vector.load %arg7[%c8, %c0_18] : memref<12x20xf32, #tpu.memory_space<vmem>>, vector<2x20xf32>
    tpu.vector_store %arg7[%c8, %c0_18], %44 {strides = array<i32>} : memref<12x20xf32, #tpu.memory_space<vmem>>, vector<2x20xf32>,
    %46 = vector.extract_strided_slice %7 {offsets = [10, 0], sizes = [2, 20], strides = [1, 1]} : vector<12x20xf32> to vector<2x20xf32>
    %cst_19 = arith.constant dense<0.000000e+00> : vector<2x20xf32>
    %47 = tpu.matmul %44, %8, %cst_19 {dimension_numbers = #tpu.dot_dimension_numbers<[1], [0], [0], [1], [0, 0, 1, 1], [], []>} : vector<2x20xf32>, vector<20x20xf32>, vector<2x20xf32> -> vector<2x20xf32>
    %48 = arith.addf %46, %47 : vector<2x20xf32>
    %49 = vector.broadcast %9 : vector<1x20xf32> to vector<2x20xf32>
    %50 = arith.addf %48, %49 : vector<2x20xf32>
    %51 = math.tanh %50 : vector<2x20xf32>
    %c10 = arith.constant 10 : index
    %c0_20 = arith.constant 0 : index
    %52 = vector.load %arg7[%c10, %c0_20] : memref<12x20xf32, #tpu.memory_space<vmem>>, vector<2x20xf32>
    tpu.vector_store %arg7[%c10, %c0_20], %51 {strides = array<i32>} : memref<12x20xf32, #tpu.memory_space<vmem>>, vector<2x20xf32>,
    %c0_21 = arith.constant 0 : index
    %c0_22 = arith.constant 0 : index
    %53 = vector.load %arg7[%c0_21, %c0_22] : memref<12x20xf32, #tpu.memory_space<vmem>>, vector<12x20xf32>
    %c0_23 = arith.constant 0 : index
    %c0_24 = arith.constant 0 : index
    %54 = vector.load %arg4[%c0_23, %c0_24] : memref<20x128xf32, #tpu.memory_space<vmem>>, vector<20x128xf32>
    %cst_25 = arith.constant dense<0.000000e+00> : vector<12x128xf32>
    %55 = tpu.matmul %53, %54, %cst_25 {dimension_numbers = #tpu.dot_dimension_numbers<[1], [0], [0], [1], [0, 0, 1, 1], [], []>} : vector<12x20xf32>, vector<20x128xf32>, vector<12x128xf32> -> vector<12x128xf32>
    %c0_26 = arith.constant 0 : index
    %c0_27 = arith.constant 0 : index
    %56 = vector.load %arg5[%c0_26, %c0_27] : memref<1x128xf32, #tpu.memory_space<vmem>>, vector<1x128xf32>
    %57 = vector.broadcast %56 : vector<1x128xf32> to vector<12x128xf32>
    %58 = arith.addf %55, %57 : vector<12x128xf32>
    %c0_28 = arith.constant 0 : index
    %c0_29 = arith.constant 0 : index
    %59 = vector.load %arg6[%c0_28, %c0_29] : memref<12x128xf32, #tpu.memory_space<vmem>>, vector<12x128xf32>
    tpu.vector_store %arg6[%c0_28, %c0_29], %58 {strides = array<i32>} : memref<12x128xf32, #tpu.memory_space<vmem>>, vector<12x128xf32>,
    return
  }
}

</mosaic_0001>

<bundles_post_ra>
// kernel: tpu_custom_call.1
= control target key start
LH: loop header
LB: loop body
LE: loop exit
PB: predicated region body
PF: predicated region fallthrough
CT: control target
= control target key end

     0   :  { %11 = vsyncpa [#allocation4], 0  ;;  %s1184_s0 = inlined_call_operand.vmem [shape: s32[12,1], index: 0, kind: input, shape index: {}]   ;;  %s1185_s1 = inlined_call_operand.hbm [shape: f32[7,20], index: 1, kind: input, shape index: {}]   ;;  %s1186_s2 = inlined_call_operand.vmem [shape: f32[20,20], index: 2, kind: input, shape index: {}]   ;;  %s1187_s3 = inlined_call_operand.vmem [shape: f32[1,20], index: 3, kind: input, shape index: {}]   ;;  %s1188_s4 = inlined_call_operand.hbm [shape: f32[20,128], index: 4, kind: input, shape index: {}]   ;;  %s1189_s5 = inlined_call_operand.vmem [shape: f32[1,128], index: 5, kind: input, shape index: {}]   ;;  %s1190_s6 = inlined_call_operand.hbm [shape: f32[12,128], index: 6, kind: output, shape index: {}]  }
   0x1   :  { %12 = vsyncpa [#allocation7], 0 }
   0x2   :  { %13 = vsyncpa [#allocation5], 0  ;;  %s1002_s21 = smov [#allocation3]   ;;  %s1003_s23 = smov [#allocation6]  }
   0x3   :  { %s22_s22 = sshll.u32 %s1002_s21, 4  ;;  %s35_s24 = sshll.u32 %s1003_s23, 4  ;;  %s23_s22 = int_to_ptr.vmem [resolvable:$true] %s22_s22  ;;  %s1046_s24 = int_to_ptr.vmem [resolvable:$true] %s35_s24 }
   0x4   :  { %s930_s27 = scalar_lea.hbm %s1185_s1, 128 }
   0x5   :  { %p931_p0 = scmp.ne.s32.totalorder %s1185_s1, %s930_s27  ;;  %p934_p1 = scmp.lt.u32.totalorder %s930_s27, %s1185_s1 }
   0x7   :  { %p936_p2 = pnand %p934_p1, %p931_p0 }
   0x9   :  { %939 = shalt.err (!%p936_p2)
}
   0xa   :  { %s940_s8 = scalar_lea.vmem %s23_s22, 128  ;;  %p945_p4 = scmp.lt.s32.totalorder %s23_s22, %s23_s22 }
   0xb   :  { %p941_p3 = scmp.ne.s32.totalorder %s23_s22, %s940_s8  ;;  %p946_p5 = scmp.lt.s32.totalorder %s940_s8, %s940_s8 }
   0xd   :  { %p947_p6 = por %p946_p5, %p945_p4 }
   0xf   :  { %p948_p7 = pnand %p947_p6, %p941_p3 }
  0x11   :  { %951 = shalt.err (!%p948_p7)
}
  0x12   :  { %25 = dma.hbm_to_vmem [thread:$0]  %s1185_s1, 128, %s23_s22, [#allocation4]  }
  0x13   :  { %s952_s13 = scalar_lea.hbm %s1188_s4, 384 }
  0x14   :  { %p953_p8 = scmp.ne.s32.totalorder %s1188_s4, %s952_s13  ;;  %p956_p9 = scmp.lt.u32.totalorder %s952_s13, %s1188_s4 }
  0x16   :  { %p958_p10 = pnand %p956_p9, %p953_p8 }
  0x18   :  { %961 = shalt.err (!%p958_p10)
}
  0x19   :  { %s962_s18 = scalar_lea.vmem %s1046_s24, 384  ;;  %p967_p12 = scmp.lt.s32.totalorder %s1046_s24, %s1046_s24 }
  0x1a   :  { %p963_p11 = scmp.ne.s32.totalorder %s1046_s24, %s962_s18  ;;  %p968_p13 = scmp.lt.s32.totalorder %s962_s18, %s962_s18 }
  0x1c   :  { %p969_p0 = por %p968_p13, %p967_p12 }
  0x1e   :  { %p970_p1 = pnand %p969_p0, %p963_p11 }
  0x20   :  { %973 = shalt.err (!%p970_p1)
}
  0x21   :  { %s1004_s1 = smov 128   ;;  %s1005_s19 = smov 8  }
  0x22   :  { %41 = dma.hbm_to_vmem [thread:$0]  %s1188_s4, 384, %s1046_s24, [#allocation7], %s1004_s1, %s1004_s1, %s1005_s19  }
  0x23   :  { %996 = dma.done.wait [#allocation4], 128  }
  0x24   :  { %997 = vsyncadd [#allocation4], 4294967168 }
  0x25   :  { %998 = dma.done.wait [#allocation7], 384  }
  0x26   :  { %999 = vsyncadd [#allocation7], 4294966912  ;;  %v1006_v0 = vmov 0   ;;  %v50_v1 = vld [vmem:[%s1184_s0] sm:$0xff]  ;;  %v1007_v3 = vmov 0.0|0.0   ;;  %v154_v4 = vld [vmem:[%s1186_s2 + $0x8] sm:$0xff]  ;;  %v52_v10 = vlaneseq }
  0x27   :  { %917 = vset.pattern.permute.xlu0 %v1006_v0  ;;  %v153_v2 = vld [vmem:[%s1186_s2] sm:$0xff]  ;;  %886 = vmatprep.subr.bf16.mxu1 %v1007_v3  ;;  %v51_v5 = vld [vmem:[%s1184_s0 + $0x8] sm:$0xf]  ;;  %v66_v7 = vld [vmem:[#allocation3] sm:$0x7f]  ;;  %vm74_vm0 = vcmask 1046528  }
  0x28   :  { %55 = vperm.xlu0 %917, %v50_v1   ;;  %v1092_v6 = vpack.c.bf16 %v154_v4, %v153_v2  ;;  %818 = vmatprep.subr.msk.mxu0 %vm74_vm0, %v66_v7  ;;  %v1098_v8 = vld [vmem:[%s1186_s2 + $0x10] sm:$0xf]  ;;  %vm161_vm1 = vcmask 1043456   ;;  %v1008_v9 = vmov 0.0   ;;  %vm1009_vm2 = vmmov 0   ;;  %v651_v51 = vld [vmem:[#allocation6] sm:$0xff] }
  0x29   :  { %819 = vmatpush3.msk.msra.mxu0 %vm74_vm0, %v66_v7  ;;  %829 = vmatprep.mubr.msk.f32.mxu1 %vm1009_vm2, %v1008_v9  ;;  %v53_v11 = vand.u32 127, %v52_v10  ;;  %vm67_vm3 = vcmask 56320   ;;  %v1125_v20 = vld [vmem:[%s1187_s3] ss:$0 sm:$0xff]  ;;  %vm244_vm6 = vcmask 156672   ;;  %vm157_vm7 = vcmask 162816  }
  0x2a   :  { %888 = vmatpush3.bf16.msra.mxu1 %v1092_v6  ;;  %889 = vmatprep.subr.bf16.mxu0 %v1007_v3  ;;  %vm325_vm8 = vcmask 158722   ;;  %vm407_vm9 = vcmask 160772   ;;  %vm489_vm10 = vcmask 162822   ;;  %v652_v52 = vld [vmem:[#allocation6 + $0x8] sm:$0xff]  ;;  %v653_v54 = vld [vmem:[#allocation6 + $0x10] sm:$0xf] }
  0x2b   :  { %827 = vmatprep.subr.mxu1 %v1008_v9  ;;  %v904_v53 = vpack.c.bf16 %v652_v52, %v651_v51  ;;  %v782_v62 = vld [vmem:[%s1189_s5] ss:$0 sm:$0xff]  ;;  %s1010_s8 = smov [#allocation8]  }
  0x2c   :  { %58 = vperm.xlu0 %917, %v51_v5   ;;  %s752_s9 = sshll.u32 %s1010_s8, 4  ;;  %s753_s9 = int_to_ptr.vmem [resolvable:$true] %s752_s9 }
  0x2d   :  { %s974_s10 = scalar_lea.vmem %s753_s9, 256  ;;  %p979_p3 = scmp.lt.s32.totalorder %s753_s9, %s753_s9 }
  0x2e   :  { %828 = vmatpush3.msk.msra.mxu1 %vm161_vm1, %v1098_v8  ;;  %p975_p2 = scmp.ne.s32.totalorder %s753_s9, %s974_s10  ;;  %p980_p4 = scmp.lt.s32.totalorder %s974_s10, %s974_s10 }
  0x2f   :  { %830 = vmatmul.mubr.f32.vlgmr.msra.gmra.mrb[0].mxu1 %v1008_v9  ;;  %892 = vmatprep.subr.bf16.mxu1 %v1007_v3 }
  0x30   :  { %894 = vmatpush3.bf16.msra.mxu1 %v1092_v6  ;;  %847 = vmatprep.mubr.msk.f32.mxu1 %vm1009_vm2, %v1008_v9  ;;  %p981_p5 = por %p980_p4, %p979_p3 }
  0x31   :  { %845 = vmatprep.subr.mxu1 %v1008_v9 }
  0x32   :  { %p982_p6 = pnand %p981_p5, %p975_p2 }
  0x34   :  { %846 = vmatpush3.msk.msra.mxu1 %vm161_vm1, %v1098_v8 }
  0x35   :  { %898 = vmatprep.subr.bf16.mxu1 %v1007_v3 }
  0xa7   :  { %v56_v12 = vpop.permute.xlu0 %55 }
  0xa8   :  { %vm60_vm4 = vcmp.eq.s32.totalorder %v56_v12, %v53_v11 }
  0xa9   :  { %v765_v13 = vsel %vm60_vm4, 1.0, %v1008_v9 }
  0xaa   :  { %820 = vmatprep.mubr.msk.f32.mxu0 %vm67_vm3, %v765_v13 }
  0xab   :  { %v59_v14 = vpop.permute.xlu0 %58 }
  0xac   :  { %vm61_vm5 = vcmp.eq.s32.totalorder %v59_v14, %v53_v11 }
  0xad   :  { %v766_v15 = vsel %vm61_vm5, 1.0, %v1008_v9 }
  0xae   :  { %821 = vmatmul.mubr.msk.f32.vlgmr.msra.gmra.mrb[0].mxu0 %vm67_vm3, %v766_v15 }
  0xaf   :  { %891 = vmatpush3.bf16.msra.mxu0 %v1092_v6  ;;  %838 = vmatprep.mubr.msk.f32.mxu0 %vm1009_vm2, %v1008_v9 }
  0xb0   :  { %836 = vmatprep.subr.mxu0 %v1008_v9 }
  0xb3   :  { %837 = vmatpush3.msk.msra.mxu0 %vm161_vm1, %v1098_v8 }
  0xb4   :  { %895 = vmatprep.subr.bf16.mxu0 %v1007_v3 }
 0x102   :  { %v231_v16 = vpop.f32.mrb[0].mxu1 }
 0x103   :  { %v831_v17 = vpop.f32.mrb[1].mxu1 }
 0x181   :  { %v1120_v18 = vpop.f32.mrb[0].mxu0 }
 0x182   :  { %v144_v19 = vpop.f32.mrb[1].mxu0 }
 0x183   :  { %v235_v21 = vadd.f32 %v231_v16, %v144_v19 }
 0x185   :  { %v242_v22 = vadd.f32 %v1125_v20, %v235_v21 }
 0x187   :  { %918 = vtanh.f32 %v242_v22 }
 0x191   :  { %v919_v23 = vpop.eup %918 }
 0x192   :  { %245 = vst.msk [vmem:[#allocation2] sm:$0x3] %vm244_vm6, %v919_v23  ;;  %839 = vmatmul.mubr.msk.f32.vlgmr.msra.gmra.mrb[2].mxu0 %vm157_vm7, %v919_v23 }
 0x193   :  { %897 = vmatpush3.bf16.msra.mxu0 %v1092_v6  ;;  %856 = vmatprep.mubr.msk.f32.mxu0 %vm1009_vm2, %v1008_v9 }
 0x194   :  { %854 = vmatprep.subr.mxu0 %v1008_v9 }
 0x197   :  { %855 = vmatpush3.msk.msra.mxu0 %vm161_vm1, %v1098_v8 }
 0x198   :  { %901 = vmatprep.subr.bf16.mxu0 %v1007_v3 }
 0x265   :  { %v315_v24 = vpop.f32.mrb[2].mxu0 }
 0x266   :  { %v320_v25 = vrot.slane %v315_v24, 6  ;;  %v840_v26 = vpop.f32.mrb[3].mxu0 }
 0x268   :  { %v322_v27 = vadd.f32 %v320_v25, %v144_v19 }
 0x26a   :  { %v323_v28 = vadd.f32 %v1125_v20, %v322_v27 }
 0x26c   :  { %920 = vtanh.f32 %v323_v28 }
 0x276   :  { %v921_v29 = vpop.eup %920 }
 0x277   :  { %326 = vst.msk [vmem:[#allocation2] sm:$0xc] %vm325_vm8, %v921_v29  ;;  %v328_v30 = vrot.slane %v921_v29, 2 }
 0x279   :  { %848 = vmatmul.mubr.msk.f32.vlgmr.msra.gmra.mrb[2].mxu1 %vm157_vm7, %v328_v30 }
 0x27a   :  { %900 = vmatpush3.bf16.msra.mxu1 %v1092_v6  ;;  %865 = vmatprep.mubr.msk.f32.mxu1 %vm1009_vm2, %v1008_v9 }
 0x27b   :  { %863 = vmatprep.subr.mxu1 %v1008_v9 }
 0x27e   :  { %864 = vmatpush3.msk.msra.mxu1 %vm161_vm1, %v1098_v8 }
 0x27f   :  { %905 = vmatprep.subr.bf16.mxu1 %v904_v53 }
 0x34c   :  { %v397_v31 = vpop.f32.mrb[2].mxu1 }
 0x34d   :  { %v402_v32 = vrot.slane %v397_v31, 4  ;;  %v849_v33 = vpop.f32.mrb[3].mxu1 }
 0x34f   :  { %v404_v34 = vadd.f32 %v402_v32, %v144_v19 }
 0x351   :  { %v405_v35 = vadd.f32 %v1125_v20, %v404_v34 }
 0x353   :  { %922 = vtanh.f32 %v405_v35 }
 0x35d   :  { %v923_v36 = vpop.eup %922 }
 0x35e   :  { %408 = vst.msk [vmem:[#allocation2] sm:$0x30] %vm407_vm9, %v923_v36  ;;  %v410_v37 = vrot.slane %v923_v36, 4 }
 0x360   :  { %857 = vmatmul.mubr.msk.f32.vlgmr.msra.gmra.mrb[4].mxu0 %vm157_vm7, %v410_v37 }
 0x361   :  { %903 = vmatpush3.bf16.msra.mxu0 %v1092_v6  ;;  %874 = vmatprep.mubr.msk.f32.mxu0 %vm1009_vm2, %v1008_v9 }
 0x362   :  { %872 = vmatprep.subr.mxu0 %v1008_v9 }
 0x365   :  { %873 = vmatpush3.msk.msra.mxu0 %vm161_vm1, %v1098_v8 }
 0x433   :  { %v479_v38 = vpop.f32.mrb[4].mxu0 }
 0x434   :  { %v484_v39 = vrot.slane %v479_v38, 2  ;;  %v858_v40 = vpop.f32.mrb[5].mxu0 }
 0x436   :  { %v486_v41 = vadd.f32 %v484_v39, %v144_v19 }
 0x438   :  { %v487_v42 = vadd.f32 %v1125_v20, %v486_v41 }
 0x43a   :  { %924 = vtanh.f32 %v487_v42 }
 0x444   :  { %v925_v43 = vpop.eup %924 }
 0x445   :  { %490 = vst.msk [vmem:[#allocation2] sm:$0xc0] %vm489_vm10, %v925_v43  ;;  %v492_v44 = vrot.slane %v925_v43, 6 }
 0x447   :  { %866 = vmatmul.mubr.msk.f32.vlgmr.msra.gmra.mrb[4].mxu1 %vm157_vm7, %v492_v44 }
 0x448   :  { %907 = vmatpush3.bf16.msra.mxu1 %v904_v53 }
 0x449   :  { %881 = vmatprep.subr.msk.mxu1 %vm161_vm1, %v653_v54 }
 0x44c   :  { %v649_v45 = vld [vmem:[#allocation2] sm:$0xff]  ;;  %882 = vmatpush3.msk.msra.mxu1 %vm161_vm1, %v653_v54 }
 0x44d   :  { %883 = vmatprep.mubr.msk.f32.mxu1 %vm157_vm7, %v649_v45 }
 0x51a   :  { %v561_v46 = vpop.f32.mrb[4].mxu1 }
 0x51b   :  { %v565_v47 = vadd.f32 %v1120_v18, %v561_v46  ;;  %v867_v48 = vpop.f32.mrb[5].mxu1 }
 0x51d   :  { %v566_v49 = vadd.f32 %v1125_v20, %v565_v47 }
 0x51f   :  { %926 = vtanh.f32 %v566_v49 }
 0x529   :  { %v927_v50 = vpop.eup %926 }
 0x52a   :  { %568 = vst.msk [vmem:[#allocation2 + $0x8] sm:$0x3] %vm244_vm6, %v927_v50  ;;  %875 = vmatmul.mubr.msk.f32.vlgmr.msra.gmra.mrb[6].mxu0 %vm157_vm7, %v927_v50 }
 0x5fd   :  { %v638_v55 = vpop.f32.mrb[6].mxu0 }
 0x5fe   :  { %v643_v56 = vrot.slane %v638_v55, 6  ;;  %v876_v57 = vpop.f32.mrb[7].mxu0 }
 0x600   :  { %v645_v58 = vadd.f32 %v1120_v18, %v643_v56 }
 0x602   :  { %v646_v59 = vadd.f32 %v1125_v20, %v645_v58 }
 0x604   :  { %928 = vtanh.f32 %v646_v59 }
 0x60e   :  { %v929_v60 = vpop.eup %928 }
 0x60f   :  { %648 = vst.msk [vmem:[#allocation2 + $0x8] sm:$0xc] %vm325_vm8, %v929_v60 }
 0x616   :  { %v650_v61 = vld [vmem:[#allocation2 + $0x8] sm:$0xf] }
 0x617   :  { %884 = vmatmul.mubr.msk.f32.vlgmr.msra.gmra.mrb[6].mxu1 %vm157_vm7, %v650_v61 }
 0x6ea   :  { %v885_v63 = vpop.f32.mrb[6].mxu1 }
 0x6eb   :  { %v742_v0 = vadd.f32 %v885_v63, %v782_v62  ;;  %v736_v1 = vpop.f32.mrb[7].mxu1 }
 0x6ec   :  { %v737_v2 = vadd.f32 %v782_v62, %v736_v1 }
 0x6ed   :  { %746 = vst [vmem:[#allocation8 + $0x8] sm:$0xf] %v742_v0 }
 0x6ee   :  { %745 = vst [vmem:[#allocation8] sm:$0xff] %v737_v2 }
 0x6ef   :  { %985 = shalt.err (!%p982_p6)
}
 0x6f0   :  { %s986_s5 = scalar_lea.hbm %s1190_s6, 256 }
 0x6f1   :  { %p987_p7 = scmp.ne.s32.totalorder %s1190_s6, %s986_s5  ;;  %p990_p8 = scmp.lt.u32.totalorder %s986_s5, %s1190_s6 }
 0x6f3   :  { %p992_p9 = pnand %p990_p8, %p987_p7 }
 0x6f5   :  { %995 = shalt.err (!%p992_p9)
}
 0x6f6   :  { %758 = dma.vmem_to_hbm [thread:$0]  %s753_s9, 256, %s1190_s6, [#allocation5], %s1004_s1, %s1004_s1, %s1005_s19  }
 0x6f7   :  { %1000 = dma.done.wait [#allocation5], 256  }
 0x6f8   :  { %1001 = vsyncadd [#allocation5], 4294967040 }
 0x6f9   :  { %762 = vsyncpa [#allocation4], 1 }
 0x6fa   :  { %763 = vsyncpa [#allocation7], 1 }
 0x6fb   :  { %764 = vsyncpa [#allocation5], 1 }

</bundles_post_ra>
